<compile_context>
chip_gen: v6e
topology: v6e:2x2x1
jax: 0.10.0
libtpu: 0.0.40
codegen_flags: <defaults>
</compile_context>

<pallas_src>
import functools
from typing import NamedTuple

import jax
import jax.numpy as jnp
from jax import lax
from jax.experimental import pallas as pl
from jax.experimental.pallas import tpu as pltpu


def _round_up(n, m):
    return ((n + m - 1) // m) * m


# ----------------------------- Static metadata --------------------------------

class VAEMeta(NamedTuple):
    d_in: int
    h_enc: int
    latent: int
    num_domains: int
    h_dec: int
    d_out: int
    # row offsets inside the packed weight slab
    o_ew1: int
    o_eb1: int
    o_ewh: int
    o_ebh: int
    o_dw1: int
    o_db1: int
    o_dw2: int
    o_db2: int
    w_rows: int
    w_cols: int


# ----------------------------- Fused Pallas kernel ----------------------------

def _make_vae_kernel(B, meta, PACK):
    """B = batch block (multiple of 8), PACK = packed output lane width."""
    D_in, H_enc, L = meta.d_in, meta.h_enc, meta.latent
    ND, H_dec, D_out = meta.num_domains, meta.h_dec, meta.d_out

    def kernel(data_ref, w_ref, out_ref):
        # -------- unpack activation slab: [x | eps | d_float] -----------------
        x = data_ref[:, 0:D_in]                              # [B, D_in]
        eps = data_ref[:, D_in:D_in + L]                     # [B, L]
        d_f = data_ref[:, D_in + L:D_in + L + 1]             # [B, 1] in {0., 1.}

        # -------- static views into the single packed weight slab -------------
        ew1 = w_ref[meta.o_ew1:meta.o_ew1 + D_in, 0:H_enc]
        eb1 = w_ref[meta.o_eb1:meta.o_eb1 + 1, 0:H_enc]
        ewh = w_ref[meta.o_ewh:meta.o_ewh + H_enc, 0:2 * L]   # fused means|log_var head
        ebh = w_ref[meta.o_ebh:meta.o_ebh + 1, 0:2 * L]
        dw1 = w_ref[meta.o_dw1:meta.o_dw1 + L + ND, 0:H_dec]
        db1 = w_ref[meta.o_db1:meta.o_db1 + 1, 0:H_dec]
        dw2 = w_ref[meta.o_dw2:meta.o_dw2 + H_dec, 0:D_out]
        db2 = w_ref[meta.o_db2:meta.o_db2 + 1, 0:D_out]

        # -------- Encoder2_1: Linear -> ReLU, fused two-head linear ------------
        h = jnp.maximum(jnp.dot(x, ew1, preferred_element_type=jnp.float32) + eb1, 0.0)
        heads = jnp.dot(h, ewh, preferred_element_type=jnp.float32) + ebh    # [B, 2L]
        means = heads[:, 0:L]
        log_var = heads[:, L:2 * L]

        # -------- Reparameterization -------------------------------------------
        z = eps * jnp.exp(0.5 * log_var) + means                             # [B, L]

        # -------- one-hot(d) / one-hot(1-d) for num_domains == 2 ---------------
        d_oh = jnp.concatenate([1.0 - d_f, d_f], axis=1)                     # [B, 2]
        # -------- Decoder: both domain codes in ONE stacked matmul -------------
        zc_both = jnp.concatenate(
            [jnp.concatenate([z, d_oh], axis=1),
             jnp.concatenate([z, 1.0 - d_oh], axis=1)], axis=0)              # [2B, L+ND]

        hd = jnp.maximum(
            jnp.dot(zc_both, dw1, preferred_element_type=jnp.float32) + db1, 0.0)
        y = jnp.dot(hd, dw2, preferred_element_type=jnp.float32) + db2       # [2B, D_out]
        # exact sigmoid via a single EUP tanh
        y = 0.5 * (jnp.tanh(0.5 * y) + 1.0)
        # F.normalize(p=2, dim=1): clamp ||row||_2 at 1e-12 <=> clamp sumsq at 1e-24
        inv_norm = lax.rsqrt(jnp.maximum(jnp.sum(y * y, axis=1, keepdims=True), 1e-24))
        y = y * inv_norm

        recon_x = y[0:B, :]
        recon_x2 = y[B:2 * B, :]

        # -------- packed lane-dense output: ONE unmasked full-width store ------
        used = 3 * L + 2 * D_out
        pieces = [means, log_var, z, recon_x, recon_x2]
        if PACK > used:
            pieces.append(jnp.zeros((B, PACK - used), jnp.float32))
        out_ref[...] = jnp.concatenate(pieces, axis=1)

    return kernel


# ----------------------------- Weight packing (once, at init) -----------------

def pack_params(params, latent, num_domains):
    """Pack all weights/biases into one [rows, cols] f32 slab, 8-row aligned."""
    enc_w1 = params["enc_w1"].astype(jnp.float32)
    enc_b1 = params["enc_b1"].astype(jnp.float32)
    enc_wh = jnp.concatenate([params["enc_wm"], params["enc_wv"]], axis=1).astype(jnp.float32)
    enc_bh = jnp.concatenate([params["enc_bm"], params["enc_bv"]], axis=1).astype(jnp.float32)
    dec_w1 = params["dec_w1"].astype(jnp.float32)
    dec_b1 = params["dec_b1"].astype(jnp.float32)
    dec_w2 = params["dec_w2"].astype(jnp.float32)
    dec_b2 = params["dec_b2"].astype(jnp.float32)

    pieces = [enc_w1, enc_b1, enc_wh, enc_bh, dec_w1, dec_b1, dec_w2, dec_b2]
    w_cols = max(int(p.shape[1]) for p in pieces)
    offs, row = [], 0
    for p in pieces:
        offs.append(row)
        row = _round_up(row + int(p.shape[0]), 8)     # 8-sublane-aligned starts
    w_rows = _round_up(row, 8)

    slab = jnp.zeros((w_rows, w_cols), jnp.float32)
    for off, p in zip(offs, pieces):
        slab = slab.at[off:off + p.shape[0], 0:p.shape[1]].set(p)

    d_in, h_enc = int(enc_w1.shape[0]), int(enc_w1.shape[1])
    h_dec, d_out = int(dec_w2.shape[0]), int(dec_w2.shape[1])
    meta = VAEMeta(
        d_in=d_in, h_enc=h_enc, latent=latent, num_domains=num_domains,
        h_dec=h_dec, d_out=d_out,
        o_ew1=offs[0], o_eb1=offs[1], o_ewh=offs[2], o_ebh=offs[3],
        o_dw1=offs[4], o_db1=offs[5], o_dw2=offs[6], o_db2=offs[7],
        w_rows=w_rows, w_cols=w_cols)
    return slab, meta


# ----------------------------- Wrapper -----------------------------------------

@functools.partial(jax.jit, static_argnames=("meta",))
def vae2_1_forward(w_slab, x, d, eps, meta):
    """Full VAE2_1 forward (conditional=False, num_domains=2) in one kernel."""
    # The (1 - d) "flipped domain" encoding is only meaningful for 2 domains.
    assert meta.num_domains == 2, "onehot(1-d) flip only valid for num_domains == 2"

    B = x.shape[0]
    D_in, L, ND = meta.d_in, meta.latent, meta.num_domains
    H_enc, H_dec, D_out = meta.h_enc, meta.h_dec, meta.d_out

    # Batch grid: block is a multiple of 8 sublanes; batch padded to the grid.
    B_BLK = min(256, _round_up(B, 8))
    B_pad = _round_up(B, B_BLK)
    grid = (B_pad // B_BLK,)

    D_data = D_in + L + 1
    PACK = _round_up(3 * L + 2 * D_out, 128)

    # Activation slab: [x | eps | d_float], one DMA.
    data = jnp.concatenate(
        [x.astype(jnp.float32), eps.astype(jnp.float32),
         d.reshape(-1, 1).astype(jnp.float32)], axis=1)
    data = jnp.pad(data, ((0, B_pad - B), (0, 0)))

    # Advisory cost estimate for XLA's scheduler.
    flops = (2 * B_pad * D_in * H_enc
             + 2 * B_pad * H_enc * 2 * L
             + 2 * (2 * B_pad) * (L + ND) * H_dec
             + 2 * (2 * B_pad) * H_dec * D_out)
    transcendentals = B_pad * L + 2 * B_pad * D_out + 2 * B_pad
    bytes_accessed = 4 * (B_pad * D_data + meta.w_rows * meta.w_cols + B_pad * PACK)

    kernel = _make_vae_kernel(B_BLK, meta, PACK)
    packed = pl.pallas_call(
        kernel,
        out_shape=jax.ShapeDtypeStruct((B_pad, PACK), jnp.float32),
        grid_spec=pltpu.PrefetchScalarGridSpec(
            num_scalar_prefetch=0,
            grid=grid,
            in_specs=[
                pl.BlockSpec((B_BLK, D_data), lambda i: (i, 0)),
                pl.BlockSpec((meta.w_rows, meta.w_cols), lambda i: (0, 0)),
            ],
            out_specs=pl.BlockSpec((B_BLK, PACK), lambda i: (i, 0)),
        ),
        compiler_params=pltpu.CompilerParams(dimension_semantics=("parallel",)),
        cost_estimate=pl.CostEstimate(flops=int(flops),
                                      transcendentals=int(transcendentals),
                                      bytes_accessed=int(bytes_accessed)),
    )(data, w_slab)

    means = packed[:B, 0:L]
    log_var = packed[:B, L:2 * L]
    z = packed[:B, 2 * L:3 * L]
    recon_x = packed[:B, 3 * L:3 * L + D_out]
    recon_x2 = packed[:B, 3 * L + D_out:3 * L + 2 * D_out]
    return recon_x, recon_x2, means, log_var, z


# ----------------------------- Param init --------------------------------------

def init_params(key, d_in, h_enc, latent, h_dec, d_out, num_domains):
    ks = jax.random.split(key, 12)

    def linear(kw, kb, fan_in, fan_out):
        # Deterministic PyTorch-style uniform init (synthetic weights).
        bound = 1.0 / jnp.sqrt(fan_in)
        w = jax.random.uniform(kw, (fan_in, fan_out), jnp.float32, -bound, bound)
        b = jax.random.uniform(kb, (1, fan_out), jnp.float32, -bound, bound)
        return w, b

    p = {}
    # Encoder2_1: Linear(d_in -> h_enc) + ReLU; means / log_var heads h_enc -> latent
    p["enc_w1"], p["enc_b1"] = linear(ks[0], ks[1], d_in, h_enc)
    p["enc_wm"], p["enc_bm"] = linear(ks[2], ks[3], h_enc, latent)
    p["enc_wv"], p["enc_bv"] = linear(ks[4], ks[5], h_enc, latent)
    # Decoder: Linear(latent+num_domains -> h_dec) + ReLU; Linear(h_dec -> d_out) + Sigmoid
    p["dec_w1"], p["dec_b1"] = linear(ks[6], ks[7], latent + num_domains, h_dec)
    p["dec_w2"], p["dec_b2"] = linear(ks[8], ks[9], h_dec, d_out)
    return p


# ----------------------------- Pure-JAX reference (for a sanity check) ---------

def ref_forward(params, x, d, eps, num_domains):
    h = jnp.maximum(x @ params["enc_w1"] + params["enc_b1"], 0.0)
    means = h @ params["enc_wm"] + params["enc_bm"]
    log_var = h @ params["enc_wv"] + params["enc_bv"]
    z = eps * jnp.exp(0.5 * log_var) + means

    def dec(dd):
        oh = jax.nn.one_hot(dd, num_domains, dtype=jnp.float32)
        zc = jnp.concatenate([z, oh], axis=1)
        hd = jnp.maximum(zc @ params["dec_w1"] + params["dec_b1"], 0.0)
        y = jax.nn.sigmoid(hd @ params["dec_w2"] + params["dec_b2"])
        n = jnp.maximum(jnp.sqrt(jnp.sum(y * y, axis=1, keepdims=True)), 1e-12)
        return y / n

    return dec(d), dec(1 - d), means, log_var, z


# ----------------------------- Main ---------------------------------------------

if __name__ == "__main__":
    B = 2
    D_IN = 32
    H_ENC = 16
    LATENT = 8
    H_DEC = 16
    D_OUT = 32
    NUM_DOMAINS = 2

    root = jax.random.PRNGKey(0)
    k_param, k_x, k_d, k_eps = jax.random.split(root, 4)

    params = init_params(k_param, D_IN, H_ENC, LATENT, H_DEC, D_OUT, NUM_DOMAINS)
    w_slab, meta = pack_params(params, LATENT, NUM_DOMAINS)

    x = jax.random.normal(k_x, (B, D_IN), jnp.float32)
    d = jax.random.randint(k_d, (B,), 0, NUM_DOMAINS)
    # TODO(synk): torch.randn eps is generated outside the kernel and passed in
    # (deterministic here) so the RNG stream is explicit and reproducible.
    eps = jax.random.normal(k_eps, (B, LATENT), jnp.float32)

    recon_x, recon_x2, means, log_var, z = vae2_1_forward(w_slab, x, d, eps, meta)
    jax.block_until_ready((recon_x, recon_x2, means, log_var, z))

    assert recon_x.shape == (B, D_OUT)
    assert recon_x2.shape == (B, D_OUT)
    assert means.shape == (B, LATENT)
    assert log_var.shape == (B, LATENT)
    assert z.shape == (B, LATENT)
    assert bool(jnp.all(jnp.isfinite(recon_x))) and bool(jnp.all(jnp.isfinite(recon_x2)))

    # Correctness vs. pure-JAX reference (lenient tolerance: MXU f32 matmuls use
    # multi-pass bf16 internally, so tiny numerical differences are expected).
    r1, r2, m_r, lv_r, z_r = ref_forward(params, x, d, eps, NUM_DOMAINS)
    for got, ref in ((recon_x, r1), (recon_x2, r2), (means, m_r),
                     (log_var, lv_r), (z, z_r)):
        assert bool(jnp.allclose(got, ref, rtol=5e-3, atol=5e-3)), "mismatch vs reference"

    print("KERNEL_OK")
</pallas_src>

<mosaic_0001>
module attributes {stable_mosaic.version = 11 : i64} {
  func.func @kernel(%arg0: i32, %arg1: memref<8x41xf32, #tpu.memory_space<vmem>>, %arg2: memref<112x32xf32, #tpu.memory_space<vmem>>, %arg3: memref<8x128xf32, #tpu.memory_space<vmem>>) attributes {dimension_semantics = [#tpu.dimension_semantics<parallel>], iteration_bounds = array<i64: 1>, scalar_prefetch = 0 : i64, scratch_operands = 0 : i64, tpu.core_type = #tpu.core_type<tc>, window_params = [{transform_indices = @transform_0, window_bounds = array<i64: 8, 41>}, {pipeline_mode = #tpu.pipeline_mode<synchronous>, transform_indices = @transform_1, window_bounds = array<i64: 112, 32>}, {transform_indices = @transform_2, window_bounds = array<i64: 8, 128>}]} {
    %c0 = arith.constant 0 : index
    %c0_0 = arith.constant 0 : index
    %0 = vector.load %arg1[%c0, %c0_0] : memref<8x41xf32, #tpu.memory_space<vmem>>, vector<8x32xf32>
    %c0_1 = arith.constant 0 : index
    %c32 = arith.constant 32 : index
    %1 = vector.load %arg1[%c0_1, %c32] : memref<8x41xf32, #tpu.memory_space<vmem>>, vector<8x8xf32>
    %c0_2 = arith.constant 0 : index
    %c40 = arith.constant 40 : index
    %2 = vector.load %arg1[%c0_2, %c40] : memref<8x41xf32, #tpu.memory_space<vmem>>, vector<8x1xf32>
    %c0_3 = arith.constant 0 : index
    %c0_4 = arith.constant 0 : index
    %3 = vector.load %arg2[%c0_3, %c0_4] : memref<112x32xf32, #tpu.memory_space<vmem>>, vector<32x16xf32>
    %c32_5 = arith.constant 32 : index
    %c0_6 = arith.constant 0 : index
    %4 = vector.load %arg2[%c32_5, %c0_6] : memref<112x32xf32, #tpu.memory_space<vmem>>, vector<1x16xf32>
    %c40_7 = arith.constant 40 : index
    %c0_8 = arith.constant 0 : index
    %5 = vector.load %arg2[%c40_7, %c0_8] : memref<112x32xf32, #tpu.memory_space<vmem>>, vector<16x16xf32>
    %c56 = arith.constant 56 : index
    %c0_9 = arith.constant 0 : index
    %6 = vector.load %arg2[%c56, %c0_9] : memref<112x32xf32, #tpu.memory_space<vmem>>, vector<1x16xf32>
    %c64 = arith.constant 64 : index
    %c0_10 = arith.constant 0 : index
    %7 = vector.load %arg2[%c64, %c0_10] : memref<112x32xf32, #tpu.memory_space<vmem>>, vector<10x16xf32>
    %c80 = arith.constant 80 : index
    %c0_11 = arith.constant 0 : index
    %8 = vector.load %arg2[%c80, %c0_11] : memref<112x32xf32, #tpu.memory_space<vmem>>, vector<1x16xf32>
    %c88 = arith.constant 88 : index
    %c0_12 = arith.constant 0 : index
    %9 = vector.load %arg2[%c88, %c0_12] : memref<112x32xf32, #tpu.memory_space<vmem>>, vector<16x32xf32>
    %c104 = arith.constant 104 : index
    %c0_13 = arith.constant 0 : index
    %10 = vector.load %arg2[%c104, %c0_13] : memref<112x32xf32, #tpu.memory_space<vmem>>, vector<1x32xf32>
    %cst = arith.constant dense<0.000000e+00> : vector<8x16xf32>
    %11 = tpu.matmul %0, %3, %cst {dimension_numbers = #tpu.dot_dimension_numbers<[1], [0], [0], [1], [0, 0, 1, 1], [], []>} : vector<8x32xf32>, vector<32x16xf32>, vector<8x16xf32> -> vector<8x16xf32>
    %12 = vector.broadcast %4 : vector<1x16xf32> to vector<8x16xf32>
    %13 = arith.addf %11, %12 : vector<8x16xf32>
    %cst_14 = arith.constant 0.000000e+00 : f32
    %14 = vector.broadcast %cst_14 : f32 to vector<8x16xf32>
    %15 = arith.maximumf %13, %14 : vector<8x16xf32>
    %cst_15 = arith.constant dense<0.000000e+00> : vector<8x16xf32>
    %16 = tpu.matmul %15, %5, %cst_15 {dimension_numbers = #tpu.dot_dimension_numbers<[1], [0], [0], [1], [0, 0, 1, 1], [], []>} : vector<8x16xf32>, vector<16x16xf32>, vector<8x16xf32> -> vector<8x16xf32>
    %17 = vector.broadcast %6 : vector<1x16xf32> to vector<8x16xf32>
    %18 = arith.addf %16, %17 : vector<8x16xf32>
    %19 = vector.extract_strided_slice %18 {offsets = [0, 0], sizes = [8, 8], strides = [1, 1]} : vector<8x16xf32> to vector<8x8xf32>
    %20 = vector.extract_strided_slice %18 {offsets = [0, 8], sizes = [8, 8], strides = [1, 1]} : vector<8x16xf32> to vector<8x8xf32>
    %cst_16 = arith.constant 5.000000e-01 : f32
    %21 = vector.broadcast %cst_16 : f32 to vector<8x8xf32>
    %22 = arith.mulf %21, %20 : vector<8x8xf32>
    %23 = math.exp %22 : vector<8x8xf32>
    %24 = arith.mulf %1, %23 : vector<8x8xf32>
    %25 = arith.addf %24, %19 : vector<8x8xf32>
    %cst_17 = arith.constant 1.000000e+00 : f32
    %26 = vector.broadcast %cst_17 : f32 to vector<8x1xf32>
    %27 = arith.subf %26, %2 : vector<8x1xf32>
    %28 = tpu.concatenate %27, %2 in 1 : vector<8x1xf32>, vector<8x1xf32> -> vector<8x2xf32>
    %29 = tpu.concatenate %25, %28 in 1 : vector<8x8xf32>, vector<8x2xf32> -> vector<8x10xf32>
    %cst_18 = arith.constant 1.000000e+00 : f32
    %30 = vector.broadcast %cst_18 : f32 to vector<8x2xf32>
    %31 = arith.subf %30, %28 : vector<8x2xf32>
    %32 = tpu.concatenate %25, %31 in 1 : vector<8x8xf32>, vector<8x2xf32> -> vector<8x10xf32>
    %33 = tpu.concatenate %29, %32 in 0 : vector<8x10xf32>, vector<8x10xf32> -> vector<16x10xf32>
    %cst_19 = arith.constant dense<0.000000e+00> : vector<16x16xf32>
    %34 = tpu.matmul %33, %7, %cst_19 {dimension_numbers = #tpu.dot_dimension_numbers<[1], [0], [0], [1], [0, 0, 1, 1], [], []>} : vector<16x10xf32>, vector<10x16xf32>, vector<16x16xf32> -> vector<16x16xf32>
    %35 = vector.broadcast %8 : vector<1x16xf32> to vector<16x16xf32>
    %36 = arith.addf %34, %35 : vector<16x16xf32>
    %cst_20 = arith.constant 0.000000e+00 : f32
    %37 = vector.broadcast %cst_20 : f32 to vector<16x16xf32>
    %38 = arith.maximumf %36, %37 : vector<16x16xf32>
    %cst_21 = arith.constant dense<0.000000e+00> : vector<16x32xf32>
    %39 = tpu.matmul %38, %9, %cst_21 {dimension_numbers = #tpu.dot_dimension_numbers<[1], [0], [0], [1], [0, 0, 1, 1], [], []>} : vector<16x16xf32>, vector<16x32xf32>, vector<16x32xf32> -> vector<16x32xf32>
    %40 = vector.broadcast %10 : vector<1x32xf32> to vector<16x32xf32>
    %41 = arith.addf %39, %40 : vector<16x32xf32>
    %cst_22 = arith.constant 5.000000e-01 : f32
    %42 = vector.broadcast %cst_22 : f32 to vector<16x32xf32>
    %43 = arith.mulf %42, %41 : vector<16x32xf32>
    %44 = math.tanh %43 : vector<16x32xf32>
    %cst_23 = arith.constant 1.000000e+00 : f32
    %45 = vector.broadcast %cst_23 : f32 to vector<16x32xf32>
    %46 = arith.addf %44, %45 : vector<16x32xf32>
    %cst_24 = arith.constant 5.000000e-01 : f32
    %47 = vector.broadcast %cst_24 : f32 to vector<16x32xf32>
    %48 = arith.mulf %47, %46 : vector<16x32xf32>
    %49 = arith.mulf %48, %48 : vector<16x32xf32>
    %cst_25 = arith.constant dense<0.000000e+00> : vector<16xf32>
    %50 = vector.multi_reduction <add>, %49, %cst_25 [1] : vector<16x32xf32> to vector<16xf32>
    %51 = vector.shape_cast %50 : vector<16xf32> to vector<16x1xf32>
    %cst_26 = arith.constant 1.000000e-24 : f32
    %52 = vector.broadcast %cst_26 : f32 to vector<16x1xf32>
    %53 = arith.maximumf %51, %52 : vector<16x1xf32>
    %54 = math.rsqrt %53 : vector<16x1xf32>
    %55 = vector.broadcast %54 : vector<16x1xf32> to vector<16x32xf32>
    %56 = arith.mulf %48, %55 : vector<16x32xf32>
    %57 = vector.extract_strided_slice %56 {offsets = [0, 0], sizes = [8, 32], strides = [1, 1]} : vector<16x32xf32> to vector<8x32xf32>
    %58 = vector.extract_strided_slice %56 {offsets = [8, 0], sizes = [8, 32], strides = [1, 1]} : vector<16x32xf32> to vector<8x32xf32>
    %cst_27 = arith.constant 0.000000e+00 : f32
    %59 = vector.broadcast %cst_27 : f32 to vector<8x40xf32>
    %60 = tpu.concatenate %19, %20, %25, %57, %58, %59 in 1 : vector<8x8xf32>, vector<8x8xf32>, vector<8x8xf32>, vector<8x32xf32>, vector<8x32xf32>, vector<8x40xf32> -> vector<8x128xf32>
    %c0_28 = arith.constant 0 : index
    %c0_29 = arith.constant 0 : index
    %61 = vector.load %arg3[%c0_28, %c0_29] : memref<8x128xf32, #tpu.memory_space<vmem>>, vector<8x128xf32>
    tpu.vector_store %arg3[%c0_28, %c0_29], %60 {strides = array<i32>} : memref<8x128xf32, #tpu.memory_space<vmem>>, vector<8x128xf32>,
    return
  }
  func.func @transform_0(%arg0: i32) -> (i32, i32) {
    %c0_i32 = arith.constant 0 : i32
    %c0_i32_0 = arith.constant 0 : i32
    return %arg0, %c0_i32 : i32, i32
  }
  func.func @transform_1(%arg0: i32) -> (i32, i32) {
    %c0_i32 = arith.constant 0 : i32
    %c0_i32_0 = arith.constant 0 : i32
    %c0_i32_1 = arith.constant 0 : i32
    return %c0_i32, %c0_i32_0 : i32, i32
  }
  func.func @transform_2(%arg0: i32) -> (i32, i32) {
    %c0_i32 = arith.constant 0 : i32
    %c0_i32_0 = arith.constant 0 : i32
    return %arg0, %c0_i32 : i32, i32
  }
}

</mosaic_0001>

<bundles_post_ra>
// kernel: vae2_1_forward.1
= control target key start
LH: loop header
LB: loop body
LE: loop exit
PB: predicated region body
PF: predicated region fallthrough
CT: control target
= control target key end

     0   :  { %v523_v0 = vmov 0.0   ;;  %vm524_vm0 = vmmov 0   ;;  %vm30_vm1 = vcmask 261120   ;;  %vm109_vm2 = vcmask 130048   ;;  %s526_s25 = smov 89   ;;  %s527_s28 = smov 8   ;;  %s610_s1 = inlined_call_operand.vmem [shape: f32[112,32], index: 1, kind: input, shape index: {}]   ;;  %s611_s0 = inlined_call_operand.vmem [shape: f32[8,41], index: 0, kind: input, shape index: {}]   ;;  %s612_s2 = inlined_call_operand.vmem [shape: f32[8,128], index: 2, kind: output, shape index: {}]  }
   0x1   :  { %471 = vmatprep.subr.mxu0 %v523_v0  ;;  %v15_v1 = vld [vmem:[%s610_s1 + $0x18] sm:$0xff]  ;;  %v14_v2 = vld [vmem:[%s610_s1 + $0x10] sm:$0xff]  ;;  %479 = vmatprep.mubr.msk.f32.mxu0 %vm524_vm0, %v523_v0  ;;  %v13_v3 = vld [vmem:[%s610_s1 + $0x8] sm:$0xff]  ;;  %vm204_vm3 = vcmask 7168   ;;  %s528_s29 = smov 24   ;;  %s529_s30 = smov 32  }
   0x2   :  { %472 = vmatpush3.msra.mxu0 %v15_v1  ;;  %482 = vmatprep.subr.mxu1 %v523_v0  ;;  %v12_v4 = vld [vmem:[%s610_s1] sm:$0xff]  ;;  %v18_v6 = vld [vmem:[%s610_s1 + $0x30] sm:$0xff]  ;;  %v17_v7 = vld [vmem:[%s610_s1 + $0x28] sm:$0xff]  ;;  %vm233_vm4 = vcmask 1041408   ;;  %s530_s7 = smov 96   ;;  %vm214_vm5 = vcmask 64512  }
   0x3   :  { %473 = vmatprep.subr.mxu0 %v523_v0  ;;  %486 = vmatprep.mubr.msk.f32.mxu1 %vm524_vm0, %v523_v0  ;;  %v11_v5 = vld [vmem:[%s611_s0] sm:$0xff]  ;;  %s525_s0 = smov 88   ;;  %v446_v14 = vld [vmem:[%s610_s1 + $0x38] ss:$0 sm:$0xff]  ;;  %v21_v24 = vld [vmem:[%s610_s1 + $0x48] sm:$0x3] }
   0x4   :  { %474 = vmatpush3.msra.mxu0 %v14_v2  ;;  %483 = vmatpush3.msra.mxu1 %v18_v6  ;;  %v444_v8 = vld [vmem:[%s610_s1 + $0x20] ss:$0 sm:$0xff]  ;;  %v196_v13 = vsub.f32 1.0, %v11_v5  ;;  %vm226_vm6 = vcmask 80896   ;;  %v23_v37 = vld [vmem:[%s610_s1 + $0x58] sm:$0xff]  ;;  %s532_s16 = smov 56  }
   0x5   :  { %475 = vmatprep.subr.mxu0 %v523_v0  ;;  %484 = vmatprep.subr.mxu1 %v523_v0  ;;  %v20_v25 = vld [vmem:[%s610_s1 + $0x40] sm:$0xff]  ;;  %v448_v38 = vld [vmem:[%s610_s1 + $0x50] ss:$0 sm:$0xff]  ;;  %v452_v45 = vld [vmem:[%s610_s1 + $0x68] ss:$0 sm:$0xff]  ;;  %vm433_vm7 = vcmask 195584  }
   0x6   :  { %476 = vmatpush3.msra.mxu0 %v13_v3  ;;  %485 = vmatpush3.msra.mxu1 %v17_v7  ;;  %v24_v36 = vld [vmem:[%s610_s1 + $0x60] sm:$0xff]  ;;  %s531_s1 = smov 112   ;;  %vm435_vm8 = vcmask 457728   ;;  %vm437_vm9 = vcmask 719872  }
   0x7   :  { %477 = vmatprep.subr.mxu0 %v523_v0  ;;  %198 = vrot.lane.b32.xlu1 %v196_v13, %s525_s0 }
   0x8   :  { %478 = vmatpush3.msra.mxu0 %v12_v4  ;;  %489 = vmatprep.subr.msk.mxu1 %vm233_vm4, %v21_v24 }
   0x9   :  { %480 = vmatmul.mubr.msk.f32.vlgmr.msra.gmra.mxu0 %vm30_vm1, %v11_v5  ;;  %496 = vmatprep.subr.mxu0 %v24_v36 }
   0xa   :  { %497 = vmatpush3.msra.mxu0 %v24_v36 }
   0xb   :  { %201 = vrot.lane.b32.xlu1 %v11_v5, %s526_s25  ;;  %498 = vmatprep.subr.mxu0 %v23_v37 }
   0xc   :  { %499 = vmatpush3.msra.mxu0 %v23_v37 }
  0x79   :  { %v199_v18 = vpop.permute.xlu1 %198 }
  0x7d   :  { %v202_v21 = vpop.permute.xlu1 %201 }
  0x7e   :  { %v205_v22 = vsel %vm204_vm3, %v199_v18, %v202_v21 }
  0x7f   :  { %211 = vrot.lane.b32.xlu1 %v205_v22, %s527_s28  ;;  %v216_v30 = vsub.f32 1.0, %v205_v22 }
  0xc9   :  { %v100_v9 = vpop.f32.mrf.mxu0 }
  0xca   :  { %v101_v10 = vadd.f32 %v444_v8, %v100_v9 }
  0xcb   :  { %v481_v11 = vpop.f32.mrf.mxu0 }
  0xcc   :  { %v104_v12 = vmax.f32 %v101_v10, 0.0 }
  0xce   :  { %487 = vmatmul.mubr.msk.f32.vlgmr.msra.gmra.mxu1 %vm109_vm2, %v104_v12 }
  0xcf   :  { %490 = vmatpush3.msk.msra.mxu1 %vm233_vm4, %v21_v24 }
  0xd0   :  { %491 = vmatprep.subr.mxu1 %v20_v25 }
  0xd1   :  { %492 = vmatpush3.msra.mxu1 %v20_v25 }
  0xf1   :  { %v212_v31 = vpop.permute.xlu1 %211 }
 0x18e   :  { %v179_v15 = vpop.f32.mrf.mxu1 }
 0x18f   :  { %v577_v16 = vadd.f32 %v446_v14, %v179_v15 }
 0x190   :  { %v488_v17 = vpop.f32.mrf.mxu1 }
 0x191   :  { %v183_v19 = vmul.f32 0.5, %v577_v16 }
 0x193   :  { %v184_v20 = vmul.f32 1.442695, %v183_v19 }
 0x195   :  { %513 = vpow2.f32 %v184_v20 }
 0x1a2   :  { %v514_v23 = vpop.eup %513 }
 0x1a3   :  { %187 = vrot.lane.b32.xlu0 %v514_v23, %s528_s29 }
 0x1a7   :  { %192 = vrot.lane.b32.xlu0 %v577_v16, %s529_s30 }
 0x215   :  { %v188_v26 = vpop.permute.xlu0 %187 }
 0x216   :  { %v190_v27 = vmul.f32 %v188_v26, %v11_v5 }
 0x219   :  { %v193_v28 = vpop.permute.xlu0 %192 }
 0x21a   :  { %v195_v29 = vadd.f32 %v193_v28, %v190_v27 }
 0x21c   :  { %207 = vrot.lane.b32.xlu0 %v195_v29, %s530_s7 }
 0x220   :  { %218 = vrot.lane.b32.xlu0 %v216_v30, %s527_s28 }
 0x28e   :  { %v208_v32 = vpop.permute.xlu0 %207 }
 0x28f   :  { %v215_v33 = vsel %vm214_vm5, %v208_v32, %v212_v31 }
 0x290   :  { %493 = vmatprep.mubr.msk.f32.mxu1 %vm226_vm6, %v215_v33 }
 0x292   :  { %v219_v34 = vpop.permute.xlu0 %218 }
 0x293   :  { %v221_v35 = vsel %vm214_vm5, %v208_v32, %v219_v34 }
 0x294   :  { %494 = vmatmul.mubr.msk.f32.vlgmr.msra.gmra.mxu1 %vm226_vm6, %v221_v35 }
 0x354   :  { %v495_v39 = vpop.f32.mrf.mxu1 }
 0x355   :  { %v309_v40 = vadd.f32 %v495_v39, %v448_v38 }
 0x356   :  { %v303_v41 = vpop.f32.mrf.mxu1 }
 0x357   :  { %v304_v42 = vadd.f32 %v448_v38, %v303_v41  ;;  %v313_v44 = vmax.f32 %v309_v40, 0.0 }
 0x359   :  { %v312_v43 = vmax.f32 %v304_v42, 0.0 }
 0x35b   :  { %500 = vmatprep.mubr.msk.f32.mxu0 %vm109_vm2, %v312_v43 }
 0x35c   :  { %501 = vmatmul.mubr.msk.f32.vlgmr.msra.gmra.mxu0 %vm109_vm2, %v313_v44 }
 0x41c   :  { %v502_v46 = vpop.f32.mrf.mxu0 }
 0x41d   :  { %v396_v47 = vadd.f32 %v502_v46, %v452_v45 }
 0x41e   :  { %v390_v48 = vpop.f32.mrf.mxu0 }
 0x41f   :  { %v400_v49 = vmul.f32 0.5, %v396_v47  ;;  %v391_v50 = vadd.f32 %v452_v45, %v390_v48 }
 0x421   :  { %515 = vtanh.f32 %v400_v49  ;;  %v399_v51 = vmul.f32 0.5, %v391_v50 }
 0x423   :  { %517 = vtanh.f32 %v399_v51 }
 0x42e   :  { %v516_v52 = vpop.eup %515 }
 0x42f   :  { %v404_v53 = vadd.f32 1.0, %v516_v52 }
 0x430   :  { %v518_v54 = vpop.eup %517 }
 0x431   :  { %v406_v55 = vmul.f32 0.5, %v404_v53  ;;  %v403_v56 = vadd.f32 1.0, %v518_v54 }
 0x433   :  { %v408_v57 = vmul.f32 %v406_v55, %v406_v55  ;;  %v405_v58 = vmul.f32 0.5, %v403_v56 }
 0x435   :  { %v412_v59 = vsel %vm30_vm1, %v408_v57, 0.0  ;;  %v407_v60 = vmul.f32 %v405_v58, %v405_v58 }
 0x436   :  { %413 = vadd.xlane.f32.xlu0 %v412_v59 }
 0x437   :  { %v409_v61 = vsel %vm30_vm1, %v407_v60, 0.0 }
 0x438   :  { %410 = vadd.xlane.f32.xlu1 %v409_v61 }
 0x44c   :  { %421 = vrot.lane.b32.xlu0 %v195_v29, %s531_s1 }
 0x4bf   :  { %v414_v62 = vpop.xlane.xlu0 %413 }
 0x4c0   :  { %v416_v0 = vmax.f32 %v414_v62, 1e-24 }
 0x4c1   :  { %v411_v63 = vpop.xlane.xlu1 %410 }
 0x4c2   :  { %v415_v1 = vmax.f32 %v411_v63, 1e-24 }
 0x4c3   :  { %v422_v6 = vpop.permute.xlu0 %421 }
 0x4c4   :  { %519 = vrsqrt.f32 %v415_v1  ;;  %v432_v8 = vsel %vm109_vm2, %v577_v16, %v422_v6 }
 0x4c5   :  { %521 = vrsqrt.f32 %v416_v0 }
 0x4d1   :  { %v520_v2 = vpop.eup %519 }
 0x4d2   :  { %v419_v3 = vmul.f32 %v520_v2, %v405_v58  ;;  %v522_v4 = vpop.eup %521 }
 0x4d3   :  { %v420_v5 = vmul.f32 %v522_v4, %v406_v55 }
 0x4d4   :  { %425 = vrot.lane.b32.xlu1 %v419_v3, %s528_s29 }
 0x4d8   :  { %429 = vrot.lane.b32.xlu1 %v420_v5, %s532_s16 }
 0x546   :  { %v426_v7 = vpop.permute.xlu1 %425 }
 0x547   :  { %v434_v9 = vsel %vm433_vm7, %v432_v8, %v426_v7 }
 0x54a   :  { %v430_v10 = vpop.permute.xlu1 %429 }
 0x54b   :  { %v436_v11 = vsel %vm435_vm8, %v434_v9, %v430_v10 }
 0x54c   :  { %v438_v12 = vsel %vm437_vm9, %v436_v11, 0.0 }
 0x54d   :  { %439 = vst [vmem:[%s612_s2] sm:$0xff] %v438_v12 }

</bundles_post_ra>
